<compile_context>
chip_gen: v5e
topology: v5e:2x2
jax: 0.10.0
libtpu: 0.0.40
codegen_flags: <defaults>
</compile_context>

<pallas_src>
import functools

import jax
import jax.numpy as jnp
from jax.experimental import pallas as pl
from jax.experimental.pallas import tpu as pltpu

LANE = 128      # lane width (last dim)
SUBLANE = 8     # sublane width (second-to-last dim, f32)
TM_CAP = 1024   # batch-tile cap; (1024,128) f32 tile = 512 KiB, far under VMEM limits


def _round_up(n, m):
    return ((n + m - 1) // m) * m


def _choose_tm(batch):
    """Pick the batch tile (tm) and padded batch.

    Policy: as large as the cap allows, but split into >=2 tiles when batch >= 16 so
    the 'parallel' grid axis can be sharded across both v7x TensorCores (zero cost on
    v5e/v6e, which just iterate)."""
    batch_p = _round_up(max(batch, 1), SUBLANE)
    if batch_p >= 2 * SUBLANE:
        tm = min(_round_up(pl.cdiv(batch_p, 2), SUBLANE), TM_CAP)
    else:
        tm = batch_p
    batch_pad = _round_up(batch_p, tm)
    return tm, batch_pad


# ---------------------------------------------------------------------------
# In-kernel helpers
# ---------------------------------------------------------------------------

def _mlp_eval(y, w_in_ref, b_in, w_h_ref, b_h, w_out_ref, b_out):
    """One ODEFunc evaluation.

    Weights are read from their (VMEM-resident) refs at the dot site; biases are
    (1, N) values whose add broadcasts on the sublane axis (nearly free on the VPU).
    Matmuls accumulate in f32 on the MXU; tanh runs on the EUP."""
    dd = w_in_ref.dtype
    h = jnp.dot(y.astype(dd), w_in_ref[...], preferred_element_type=jnp.float32) + b_in
    h = jnp.tanh(h)
    h = jnp.dot(h.astype(dd), w_h_ref[...], preferred_element_type=jnp.float32) + b_h
    h = jnp.tanh(h)
    h = jnp.dot(h.astype(dd), w_h_ref[...], preferred_element_type=jnp.float32) + b_h
    h = jnp.tanh(h)
    return jnp.dot(h.astype(dd), w_out_ref[...], preferred_element_type=jnp.float32) + b_out


# ---------------------------------------------------------------------------
# Kernels
# ---------------------------------------------------------------------------

def _odefunc_eval_kernel(y_ref, w_in_ref, b_in_ref, w_h_ref, b_h_ref,
                         w_out_ref, b_out_ref, o_ref):
    b_in = b_in_ref[...]     # (1, hp) — no (tm, N) materialization
    b_h = b_h_ref[...]
    b_out = b_out_ref[...]
    out = _mlp_eval(y_ref[...].astype(jnp.float32),
                    w_in_ref, b_in, w_h_ref, b_h, w_out_ref, b_out)
    o_ref[...] = out.astype(o_ref.dtype)


def _odefunc_euler_kernel(y_ref, w_in_ref, b_in_ref, w_h_ref, b_h_ref,
                          w_out_ref, b_out_ref, o_ref, *, num_steps, dt):
    """Fused forward-Euler integrator: num_steps ODEFunc evals in ONE pallas_call.

    Weights/biases stay resident in VMEM for the whole integration; only the final
    state is written back. The static-trip-count loop is fully unrolled so the LLO
    scheduler can overlap MXU pushes / EUP tanh / bias adds across step boundaries."""
    b_in = b_in_ref[...]
    b_h = b_h_ref[...]
    b_out = b_out_ref[...]

    def step(_, y):
        dy = _mlp_eval(y, w_in_ref, b_in, w_h_ref, b_h, w_out_ref, b_out)
        return y + dt * dy

    y = jax.lax.fori_loop(0, num_steps, step, y_ref[...].astype(jnp.float32),
                          unroll=True)
    o_ref[...] = y.astype(o_ref.dtype)


# ---------------------------------------------------------------------------
# pallas_call plumbing (operates on already-padded state)
# ---------------------------------------------------------------------------

def _cost_estimate(batch_p, dp, hp, num_evals, padded_params):
    flops = 2 * batch_p * (2 * dp * hp + 2 * hp * hp) * num_evals
    transcendentals = 3 * batch_p * hp * num_evals
    weight_bytes = sum(int(a.size) * a.dtype.itemsize for a in padded_params)
    bytes_accessed = weight_bytes + 2 * batch_p * dp * 4
    return pl.CostEstimate(flops=flops, transcendentals=transcendentals,
                           bytes_accessed=bytes_accessed)


def _call_padded_state(kernel_fn, y_p, padded_params, *, num_evals, alias):
    """Core pallas_call on padded (batch_p, dp) state: lane-dense blocks, batch grid
    marked 'parallel' (megacore on v7x), weights resident in VMEM across the grid."""
    w_in, b_in, w_h, b_h, w_out, b_out = padded_params
    batch_p, dp = y_p.shape
    hp = w_in.shape[1]
    assert batch_p % SUBLANE == 0 and dp % LANE == 0, "state must be pre-padded"

    tm, _ = _choose_tm(batch_p)
    if batch_p % tm != 0:           # arbitrary pre-padded batch: safe fallback
        tm = SUBLANE

    y_spec = pl.BlockSpec((tm, dp), lambda i: (i, 0))
    out_spec = pl.BlockSpec((tm, dp), lambda i: (i, 0))
    # Whole array, same block for every batch tile -> loaded once, resident in VMEM.
    resident = lambda a: pl.BlockSpec(a.shape, lambda i: (0, 0))

    return pl.pallas_call(
        kernel_fn,
        out_shape=jax.ShapeDtypeStruct((batch_p, dp), y_p.dtype),
        grid=(batch_p // tm,),
        in_specs=[y_spec, resident(w_in), resident(b_in), resident(w_h),
                  resident(b_h), resident(w_out), resident(b_out)],
        out_specs=out_spec,
        input_output_aliases={0: 0} if alias else {},
        cost_estimate=_cost_estimate(batch_p, dp, hp, num_evals, padded_params),
        compiler_params=pltpu.CompilerParams(
            dimension_semantics=("parallel",)),
    )(y_p, w_in, b_in, w_h, b_h, w_out, b_out)


# ---------------------------------------------------------------------------
# State padding helpers (pad once before a solver loop, un-pad once after)
# ---------------------------------------------------------------------------

def pad_state(y):
    """Pad y -> lane-dense (batch_pad, dp) layout. Zero padding is exact here
    (tanh(0)=0, padded weight rows/cols and biases are zero)."""
    batch, inp_dim = y.shape
    dp = _round_up(inp_dim, LANE)
    _, batch_pad = _choose_tm(batch)
    y_p = jnp.pad(y, ((0, batch_pad - batch), (0, dp - inp_dim)))
    padded = (batch_pad > batch) or (dp > inp_dim)
    return y_p, (batch, inp_dim), padded


def unpad_state(y_p, logical_shape):
    batch, inp_dim = logical_shape
    return y_p[:batch, :inp_dim]


# ---------------------------------------------------------------------------
# Public entry points
# ---------------------------------------------------------------------------

def odefunc_forward_padded(t, y_p, padded_params, *, alias=False):
    """Single ODEFunc eval on already-padded state (no per-call pad/slice)."""
    del t  # unused by the math, as in the reference forward
    return _call_padded_state(_odefunc_eval_kernel, y_p, padded_params,
                              num_evals=1, alias=alias)


def odefunc_forward(t, y, padded_params):
    """Single ODEFunc.forward(t, y) evaluation (matches the PyTorch module)."""
    y_p, logical, padded = pad_state(y)
    out_p = odefunc_forward_padded(t, y_p, padded_params, alias=padded)
    return unpad_state(out_p, logical)


def odefunc_integrate_euler(t0, y0, padded_params, *, num_steps, dt):
    """num_steps forward-Euler steps of dy/dt = ODEFunc(t, y), fused in one kernel
    (weights stay VMEM-resident across all evaluations)."""
    del t0  # ODEFunc ignores t
    y_p, logical, padded = pad_state(y0)
    kernel = functools.partial(_odefunc_euler_kernel,
                               num_steps=int(num_steps), dt=float(dt))
    out_p = _call_padded_state(kernel, y_p, padded_params,
                               num_evals=int(num_steps), alias=padded)
    return unpad_state(out_p, logical)


# ---------------------------------------------------------------------------
# Parameter construction (matches nn.init.normal_(std=0.1), bias=0)
# ---------------------------------------------------------------------------

def init_params(key, inp_dim, hide_dim):
    """Logical (unpadded) params; weights stored as (in_features, out_features)."""
    k1, k2, k3 = jax.random.split(key, 3)
    w_in = 0.1 * jax.random.normal(k1, (inp_dim, hide_dim), jnp.float32)
    b_in = jnp.zeros((1, hide_dim), jnp.float32)
    w_h = 0.1 * jax.random.normal(k2, (hide_dim, hide_dim), jnp.float32)
    b_h = jnp.zeros((1, hide_dim), jnp.float32)
    w_out = 0.1 * jax.random.normal(k3, (hide_dim, inp_dim), jnp.float32)
    b_out = jnp.zeros((1, inp_dim), jnp.float32)
    return (w_in, b_in, w_h, b_h, w_out, b_out)


def pad_params(params, inp_dim, hide_dim, weight_dtype=jnp.float32):
    """Zero-pad feature dims to one lane (128) — done ONCE, outside the per-eval path.
    weight_dtype=jnp.bfloat16 pre-casts weights once for bf16 MXU operands (v6e/v7x);
    keep f32 (default) for exact parity with the reference. Biases stay f32."""
    # TODO(synk): validate the bf16 weight path end-to-end at the intended
    # num_steps/dt before enabling it by default (error accumulates per Euler step).
    w_in, b_in, w_h, b_h, w_out, b_out = params
    dp = _round_up(inp_dim, LANE)
    hp = _round_up(hide_dim, LANE)

    def pad2(a, rows, cols):
        return jnp.pad(a, ((0, rows - a.shape[0]), (0, cols - a.shape[1])))

    return (pad2(w_in, dp, hp).astype(weight_dtype), pad2(b_in, 1, hp),
            pad2(w_h, hp, hp).astype(weight_dtype), pad2(b_h, 1, hp),
            pad2(w_out, hp, dp).astype(weight_dtype), pad2(b_out, 1, dp))


# ---------------------------------------------------------------------------
# Pure-JAX references
# ---------------------------------------------------------------------------

def odefunc_ref(t, y, params):
    del t
    w_in, b_in, w_h, b_h, w_out, b_out = params
    h = jnp.tanh(y @ w_in + b_in)
    h = jnp.tanh(h @ w_h + b_h)
    h = jnp.tanh(h @ w_h + b_h)
    return h @ w_out + b_out


def euler_ref(y, params, num_steps, dt):
    def step(_, y):
        return y + dt * odefunc_ref(None, y, params)
    return jax.lax.fori_loop(0, num_steps, step, y)


if __name__ == "__main__":
    key = jax.random.PRNGKey(0)
    kp, ky = jax.random.split(key)

    batch, inp_dim, hide_dim = 8, 16, 32
    params = init_params(kp, inp_dim, hide_dim)
    padded_params = pad_params(params, inp_dim, hide_dim)   # f32 (exact parity)
    y = jax.random.normal(ky, (batch, inp_dim), jnp.float32)
    t = jnp.float32(0.0)  # unused by the forward math

    # Single forward evaluation (module semantics).
    out = jax.block_until_ready(odefunc_forward(t, y, padded_params))
    ref = odefunc_ref(t, y, params)
    assert out.shape == (batch, inp_dim)
    assert jnp.allclose(out, ref, atol=1e-5, rtol=1e-5), "forward mismatch vs reference"

    # Padded-state path (state kept lane-dense across repeated calls).
    y_p, logical, _ = pad_state(y)
    out_pp = jax.block_until_ready(odefunc_forward_padded(t, y_p, padded_params))
    assert jnp.allclose(unpad_state(out_pp, logical), ref, atol=1e-5, rtol=1e-5), \
        "padded-state forward mismatch vs reference"

    # Fused multi-eval Euler integrator: 16 steps, 64 matmuls, one pallas_call,
    # weights resident in VMEM, loop fully unrolled.
    num_steps, dt = 16, 0.05
    out2 = jax.block_until_ready(
        odefunc_integrate_euler(t, y, padded_params, num_steps=num_steps, dt=dt))
    ref2 = euler_ref(y, params, num_steps, dt)
    assert out2.shape == (batch, inp_dim)
    assert jnp.allclose(out2, ref2, atol=1e-4, rtol=1e-4), "fused Euler mismatch vs reference"

    print("KERNEL_OK")
</pallas_src>

<mosaic_0001>
module attributes {stable_mosaic.version = 11 : i64} {
  func.func @_odefunc_eval_kernel(%arg0: i32, %arg1: memref<8x128xf32, #tpu.memory_space<vmem>>, %arg2: memref<128x128xf32, #tpu.memory_space<vmem>>, %arg3: memref<1x128xf32, #tpu.memory_space<vmem>>, %arg4: memref<128x128xf32, #tpu.memory_space<vmem>>, %arg5: memref<1x128xf32, #tpu.memory_space<vmem>>, %arg6: memref<128x128xf32, #tpu.memory_space<vmem>>, %arg7: memref<1x128xf32, #tpu.memory_space<vmem>>, %arg8: memref<8x128xf32, #tpu.memory_space<vmem>>) attributes {dimension_semantics = [#tpu.dimension_semantics<parallel>], iteration_bounds = array<i64: 1>, scalar_prefetch = 0 : i64, scratch_operands = 0 : i64, tpu.core_type = #tpu.core_type<tc>, window_params = [{transform_indices = @transform_0, window_bounds = array<i64: 8, 128>}, {pipeline_mode = #tpu.pipeline_mode<synchronous>, transform_indices = @transform_1, window_bounds = array<i64: 128, 128>}, {pipeline_mode = #tpu.pipeline_mode<synchronous>, transform_indices = @transform_2, window_bounds = array<i64: 1, 128>}, {pipeline_mode = #tpu.pipeline_mode<synchronous>, transform_indices = @transform_3, window_bounds = array<i64: 128, 128>}, {pipeline_mode = #tpu.pipeline_mode<synchronous>, transform_indices = @transform_4, window_bounds = array<i64: 1, 128>}, {pipeline_mode = #tpu.pipeline_mode<synchronous>, transform_indices = @transform_5, window_bounds = array<i64: 128, 128>}, {pipeline_mode = #tpu.pipeline_mode<synchronous>, transform_indices = @transform_6, window_bounds = array<i64: 1, 128>}, {transform_indices = @transform_7, window_bounds = array<i64: 8, 128>}]} {
    %c0 = arith.constant 0 : index
    %c0_0 = arith.constant 0 : index
    %0 = vector.load %arg3[%c0, %c0_0] : memref<1x128xf32, #tpu.memory_space<vmem>>, vector<1x128xf32>
    %c0_1 = arith.constant 0 : index
    %c0_2 = arith.constant 0 : index
    %1 = vector.load %arg5[%c0_1, %c0_2] : memref<1x128xf32, #tpu.memory_space<vmem>>, vector<1x128xf32>
    %c0_3 = arith.constant 0 : index
    %c0_4 = arith.constant 0 : index
    %2 = vector.load %arg7[%c0_3, %c0_4] : memref<1x128xf32, #tpu.memory_space<vmem>>, vector<1x128xf32>
    %c0_5 = arith.constant 0 : index
    %c0_6 = arith.constant 0 : index
    %3 = vector.load %arg1[%c0_5, %c0_6] : memref<8x128xf32, #tpu.memory_space<vmem>>, vector<8x128xf32>
    %c0_7 = arith.constant 0 : index
    %c0_8 = arith.constant 0 : index
    %4 = vector.load %arg2[%c0_7, %c0_8] : memref<128x128xf32, #tpu.memory_space<vmem>>, vector<128x128xf32>
    %cst = arith.constant dense<0.000000e+00> : vector<8x128xf32>
    %5 = tpu.matmul %3, %4, %cst {dimension_numbers = #tpu.dot_dimension_numbers<[1], [0], [0], [1], [0, 0, 1, 1], [], []>} : vector<8x128xf32>, vector<128x128xf32>, vector<8x128xf32> -> vector<8x128xf32>
    %6 = vector.broadcast %0 : vector<1x128xf32> to vector<8x128xf32>
    %7 = arith.addf %5, %6 : vector<8x128xf32>
    %8 = math.tanh %7 : vector<8x128xf32>
    %c0_9 = arith.constant 0 : index
    %c0_10 = arith.constant 0 : index
    %9 = vector.load %arg4[%c0_9, %c0_10] : memref<128x128xf32, #tpu.memory_space<vmem>>, vector<128x128xf32>
    %cst_11 = arith.constant dense<0.000000e+00> : vector<8x128xf32>
    %10 = tpu.matmul %8, %9, %cst_11 {dimension_numbers = #tpu.dot_dimension_numbers<[1], [0], [0], [1], [0, 0, 1, 1], [], []>} : vector<8x128xf32>, vector<128x128xf32>, vector<8x128xf32> -> vector<8x128xf32>
    %11 = vector.broadcast %1 : vector<1x128xf32> to vector<8x128xf32>
    %12 = arith.addf %10, %11 : vector<8x128xf32>
    %13 = math.tanh %12 : vector<8x128xf32>
    %c0_12 = arith.constant 0 : index
    %c0_13 = arith.constant 0 : index
    %14 = vector.load %arg4[%c0_12, %c0_13] : memref<128x128xf32, #tpu.memory_space<vmem>>, vector<128x128xf32>
    %cst_14 = arith.constant dense<0.000000e+00> : vector<8x128xf32>
    %15 = tpu.matmul %13, %14, %cst_14 {dimension_numbers = #tpu.dot_dimension_numbers<[1], [0], [0], [1], [0, 0, 1, 1], [], []>} : vector<8x128xf32>, vector<128x128xf32>, vector<8x128xf32> -> vector<8x128xf32>
    %16 = vector.broadcast %1 : vector<1x128xf32> to vector<8x128xf32>
    %17 = arith.addf %15, %16 : vector<8x128xf32>
    %18 = math.tanh %17 : vector<8x128xf32>
    %c0_15 = arith.constant 0 : index
    %c0_16 = arith.constant 0 : index
    %19 = vector.load %arg6[%c0_15, %c0_16] : memref<128x128xf32, #tpu.memory_space<vmem>>, vector<128x128xf32>
    %cst_17 = arith.constant dense<0.000000e+00> : vector<8x128xf32>
    %20 = tpu.matmul %18, %19, %cst_17 {dimension_numbers = #tpu.dot_dimension_numbers<[1], [0], [0], [1], [0, 0, 1, 1], [], []>} : vector<8x128xf32>, vector<128x128xf32>, vector<8x128xf32> -> vector<8x128xf32>
    %21 = vector.broadcast %2 : vector<1x128xf32> to vector<8x128xf32>
    %22 = arith.addf %20, %21 : vector<8x128xf32>
    %c0_18 = arith.constant 0 : index
    %c0_19 = arith.constant 0 : index
    %23 = vector.load %arg8[%c0_18, %c0_19] : memref<8x128xf32, #tpu.memory_space<vmem>>, vector<8x128xf32>
    tpu.vector_store %arg8[%c0_18, %c0_19], %22 {strides = array<i32>} : memref<8x128xf32, #tpu.memory_space<vmem>>, vector<8x128xf32>,
    return
  }
  func.func @transform_0(%arg0: i32) -> (i32, i32) {
    %c0_i32 = arith.constant 0 : i32
    %c0_i32_0 = arith.constant 0 : i32
    return %arg0, %c0_i32 : i32, i32
  }
  func.func @transform_1(%arg0: i32) -> (i32, i32) {
    %c0_i32 = arith.constant 0 : i32
    %c0_i32_0 = arith.constant 0 : i32
    %c0_i32_1 = arith.constant 0 : i32
    return %c0_i32, %c0_i32_0 : i32, i32
  }
  func.func @transform_2(%arg0: i32) -> (i32, i32) {
    %c0_i32 = arith.constant 0 : i32
    %c0_i32_0 = arith.constant 0 : i32
    %c0_i32_1 = arith.constant 0 : i32
    return %c0_i32, %c0_i32_0 : i32, i32
  }
  func.func @transform_3(%arg0: i32) -> (i32, i32) {
    %c0_i32 = arith.constant 0 : i32
    %c0_i32_0 = arith.constant 0 : i32
    %c0_i32_1 = arith.constant 0 : i32
    return %c0_i32, %c0_i32_0 : i32, i32
  }
  func.func @transform_4(%arg0: i32) -> (i32, i32) {
    %c0_i32 = arith.constant 0 : i32
    %c0_i32_0 = arith.constant 0 : i32
    %c0_i32_1 = arith.constant 0 : i32
    return %c0_i32, %c0_i32_0 : i32, i32
  }
  func.func @transform_5(%arg0: i32) -> (i32, i32) {
    %c0_i32 = arith.constant 0 : i32
    %c0_i32_0 = arith.constant 0 : i32
    %c0_i32_1 = arith.constant 0 : i32
    return %c0_i32, %c0_i32_0 : i32, i32
  }
  func.func @transform_6(%arg0: i32) -> (i32, i32) {
    %c0_i32 = arith.constant 0 : i32
    %c0_i32_0 = arith.constant 0 : i32
    %c0_i32_1 = arith.constant 0 : i32
    return %c0_i32, %c0_i32_0 : i32, i32
  }
  func.func @transform_7(%arg0: i32) -> (i32, i32) {
    %c0_i32 = arith.constant 0 : i32
    %c0_i32_0 = arith.constant 0 : i32
    return %arg0, %c0_i32 : i32, i32
  }
}

</mosaic_0001>

<bundles_post_ra>
// kernel: tpu_custom_call.1
= control target key start
LH: loop header
LB: loop body
LE: loop exit
PB: predicated region body
PF: predicated region fallthrough
CT: control target
= control target key end

     0   :  { %12 = vsyncpa [#allocation3], 0  ;;  %s467_s0 = inlined_call_operand.hbm [shape: f32[8,128], index: 0, kind: input, shape index: {}, may-alias: {0,7}]   ;;  %s468_s1 = inlined_call_operand.hbm [shape: f32[128,128], index: 1, kind: input, shape index: {}]   ;;  %s469_s2 = inlined_call_operand.vmem [shape: f32[1,128], index: 2, kind: input, shape index: {}]   ;;  %s470_s3 = inlined_call_operand.hbm [shape: f32[128,128], index: 3, kind: input, shape index: {}]   ;;  %s471_s4 = inlined_call_operand.vmem [shape: f32[1,128], index: 4, kind: input, shape index: {}]   ;;  %s472_s5 = inlined_call_operand.hbm [shape: f32[128,128], index: 5, kind: input, shape index: {}]   ;;  %s473_s6 = inlined_call_operand.vmem [shape: f32[1,128], index: 6, kind: input, shape index: {}]   ;;  %s474_s7 = inlined_call_operand.hbm [shape: f32[8,128], index: 7, kind: output, shape index: {}, may-alias: {0,7}]  }
   0x1   :  { %13 = vsyncpa [#allocation6], 0 }
   0x2   :  { %14 = vsyncpa [#allocation9], 0  ;;  %s31_s26 = sshll.u32 %s468_s1, 4  ;;  %s32_s26 = int_to_ptr.hbm [resolvable:$true] %s31_s26 }
   0x3   :  { %15 = vsyncpa [#allocation4], 0  ;;  %s396_s27 = smov [#allocation5]   ;;  %s21_s8 = sshll.u32 %s467_s0, 4  ;;  %s22_s8 = int_to_ptr.hbm [resolvable:$true] %s21_s8 }
   0x4   :  { %s33_s28 = sshll.u32 %s396_s27, 4  ;;  %s397_s9 = smov 128   ;;  %s34_s28 = int_to_ptr.vmem [resolvable:$true] %s33_s28 }
   0x5   :  { %s398_s10 = smov 8   ;;  %s399_s11 = smov [#allocation2]  }
   0x6   :  { %39 = dma.hbm_to_vmem [thread:$0]  %s32_s26, 2048, %s34_s28, [#allocation6], %s397_s9, %s397_s9, %s398_s10  }
   0x7   :  { %s23_s12 = sshll.u32 %s399_s11, 4  ;;  %s46_s15 = sshll.u32 %s470_s3, 4  ;;  %s24_s12 = int_to_ptr.vmem [resolvable:$true] %s23_s12  ;;  %s47_s15 = int_to_ptr.hbm [resolvable:$true] %s46_s15 }
   0x8   :  { %26 = dma.hbm_to_vmem [thread:$0]  %s22_s8, 128, %s24_s12, [#allocation3]  }
   0x9   :  { %s61_s17 = sshll.u32 %s472_s5, 4  ;;  %s400_s18 = smov [#allocation7]   ;;  %s62_s17 = int_to_ptr.hbm [resolvable:$true] %s61_s17 }
   0xa   :  { %s48_s19 = sshll.u32 %s400_s18, 4  ;;  %s401_s0 = smov [#allocation8]   ;;  %s49_s19 = int_to_ptr.vmem [resolvable:$true] %s48_s19 }
   0xb   :  { %54 = dma.hbm_to_vmem [thread:$0]  %s47_s15, 2048, %s49_s19, [#allocation6], %s397_s9, %s397_s9, %s398_s10  }
   0xc   :  { %s63_s20 = sshll.u32 %s401_s0, 4  ;;  %s64_s20 = int_to_ptr.vmem [resolvable:$true] %s63_s20 }
   0xd   :  { %69 = dma.hbm_to_vmem [thread:$0]  %s62_s17, 2048, %s64_s20, [#allocation9], %s397_s9, %s397_s9, %s398_s10  }
   0xe   :  { %388 = dma.done.wait [#allocation3], 128  }
   0xf   :  { %389 = vsyncadd [#allocation3], 4294967168 }
  0x10   :  { %390 = dma.done.wait [#allocation6], 4096  }
  0x11   :  { %391 = vsyncadd [#allocation6], 4294963200 }
  0x12   :  { %392 = dma.done.wait [#allocation9], 2048  }
  0x13   :  { %393 = vsyncadd [#allocation9], 4294965248  ;;  %v107_v0 = vld [vmem:[#allocation5 + $0x78] sm:$0xff]  ;;  %v106_v1 = vld [vmem:[#allocation5 + $0x70] sm:$0xff]  ;;  %s402_s23 = smov [#allocation10]   ;;  %s240_s27 = sshll.u32 %s474_s7, 4  ;;  %s241_s27 = int_to_ptr.hbm [resolvable:$true] %s240_s27 }
  0x14   :  { %111 = vmatpush.msra.mxu0 %v107_v0  ;;  %v105_v2 = vld [vmem:[#allocation5 + $0x68] sm:$0xff]  ;;  %v104_v3 = vld [vmem:[#allocation5 + $0x60] sm:$0xff]  ;;  %v147_v4 = vld [vmem:[#allocation7 + $0x78] sm:$0xff]  ;;  %s238_s24 = sshll.u32 %s402_s23, 4  ;;  %s239_s24 = int_to_ptr.vmem [resolvable:$true] %s238_s24 }
  0x15   :  { %v103_v5 = vld [vmem:[#allocation5 + $0x58] sm:$0xff]  ;;  %151 = vmatpush.msra.mxu1 %v147_v4  ;;  %v146_v6 = vld [vmem:[#allocation7 + $0x70] sm:$0xff]  ;;  %172 = vmatpush.msra.mxu2 %v147_v4  ;;  %v145_v7 = vld [vmem:[#allocation7 + $0x68] sm:$0xff] }
  0x16   :  { %112 = vmatpush.msra.mxu0 %v106_v1  ;;  %v102_v8 = vld [vmem:[#allocation5 + $0x50] sm:$0xff]  ;;  %v144_v9 = vld [vmem:[#allocation7 + $0x60] sm:$0xff]  ;;  %v101_v10 = vld [vmem:[#allocation5 + $0x48] sm:$0xff] }
  0x17   :  { %152 = vmatpush.msra.mxu1 %v146_v6  ;;  %173 = vmatpush.msra.mxu2 %v146_v6  ;;  %v143_v11 = vld [vmem:[#allocation7 + $0x58] sm:$0xff]  ;;  %v100_v12 = vld [vmem:[#allocation5 + $0x40] sm:$0xff]  ;;  %v142_v13 = vld [vmem:[#allocation7 + $0x50] sm:$0xff] }
  0x18   :  { %113 = vmatpush.msra.mxu0 %v105_v2  ;;  %v99_v14 = vld [vmem:[#allocation5 + $0x38] sm:$0xff]  ;;  %v141_v15 = vld [vmem:[#allocation7 + $0x48] sm:$0xff]  ;;  %v98_v16 = vld [vmem:[#allocation5 + $0x30] sm:$0xff] }
  0x19   :  { %153 = vmatpush.msra.mxu1 %v145_v7  ;;  %174 = vmatpush.msra.mxu2 %v145_v7  ;;  %v140_v17 = vld [vmem:[#allocation7 + $0x40] sm:$0xff]  ;;  %v97_v18 = vld [vmem:[#allocation5 + $0x28] sm:$0xff]  ;;  %v139_v19 = vld [vmem:[#allocation7 + $0x38] sm:$0xff] }
  0x1a   :  { %114 = vmatpush.msra.mxu0 %v104_v3  ;;  %v96_v20 = vld [vmem:[#allocation5 + $0x20] sm:$0xff]  ;;  %v138_v21 = vld [vmem:[#allocation7 + $0x30] sm:$0xff]  ;;  %v95_v22 = vld [vmem:[#allocation5 + $0x18] sm:$0xff] }
  0x1b   :  { %154 = vmatpush.msra.mxu1 %v144_v9  ;;  %175 = vmatpush.msra.mxu2 %v144_v9  ;;  %v137_v23 = vld [vmem:[#allocation7 + $0x28] sm:$0xff]  ;;  %v94_v24 = vld [vmem:[#allocation5 + $0x10] sm:$0xff]  ;;  %v92_v26 = vld [vmem:[#allocation5] sm:$0xff] }
  0x1c   :  { %115 = vmatpush.msra.mxu0 %v103_v5  ;;  %v93_v25 = vld [vmem:[#allocation5 + $0x8] sm:$0xff]  ;;  %v91_v27 = vld [vmem:[#allocation2] sm:$0xff]  ;;  %v136_v28 = vld [vmem:[#allocation7 + $0x20] sm:$0xff] }
  0x1d   :  { %155 = vmatpush.msra.mxu1 %v143_v11  ;;  %176 = vmatpush.msra.mxu2 %v143_v11  ;;  %v135_v29 = vld [vmem:[#allocation7 + $0x18] sm:$0xff]  ;;  %v134_v30 = vld [vmem:[#allocation7 + $0x10] sm:$0xff]  ;;  %v133_v31 = vld [vmem:[#allocation7 + $0x8] sm:$0xff] }
  0x1e   :  { %116 = vmatpush.msra.mxu0 %v102_v8  ;;  %v132_v32 = vld [vmem:[#allocation7] sm:$0xff]  ;;  %v259_v33 = vld [vmem:[%s469_s2] ss:$0 sm:$0xff]  ;;  %v207_v38 = vld [vmem:[#allocation8 + $0x70] sm:$0xff] }
  0x1f   :  { %156 = vmatpush.msra.mxu1 %v142_v13  ;;  %177 = vmatpush.msra.mxu2 %v142_v13  ;;  %v208_v37 = vld [vmem:[#allocation8 + $0x78] sm:$0xff]  ;;  %v206_v39 = vld [vmem:[#allocation8 + $0x68] sm:$0xff]  ;;  %v205_v40 = vld [vmem:[#allocation8 + $0x60] sm:$0xff] }
  0x20   :  { %117 = vmatpush.msra.mxu0 %v101_v10  ;;  %212 = vmatpush.msra.mxu3 %v208_v37  ;;  %v204_v41 = vld [vmem:[#allocation8 + $0x58] sm:$0xff]  ;;  %v203_v42 = vld [vmem:[#allocation8 + $0x50] sm:$0xff]  ;;  %v202_v43 = vld [vmem:[#allocation8 + $0x48] sm:$0xff] }
  0x21   :  { %157 = vmatpush.msra.mxu1 %v141_v15  ;;  %178 = vmatpush.msra.mxu2 %v141_v15  ;;  %v201_v44 = vld [vmem:[#allocation8 + $0x40] sm:$0xff]  ;;  %v200_v45 = vld [vmem:[#allocation8 + $0x38] sm:$0xff]  ;;  %v199_v46 = vld [vmem:[#allocation8 + $0x30] sm:$0xff] }
  0x22   :  { %118 = vmatpush.msra.mxu0 %v100_v12  ;;  %213 = vmatpush.msra.mxu3 %v207_v38  ;;  %v198_v47 = vld [vmem:[#allocation8 + $0x28] sm:$0xff]  ;;  %v260_v48 = vld [vmem:[%s471_s4] ss:$0 sm:$0xff]  ;;  %v197_v52 = vld [vmem:[#allocation8 + $0x20] sm:$0xff] }
  0x23   :  { %158 = vmatpush.msra.mxu1 %v140_v17  ;;  %179 = vmatpush.msra.mxu2 %v140_v17  ;;  %v196_v53 = vld [vmem:[#allocation8 + $0x18] sm:$0xff]  ;;  %v195_v54 = vld [vmem:[#allocation8 + $0x10] sm:$0xff]  ;;  %v194_v55 = vld [vmem:[#allocation8 + $0x8] sm:$0xff] }
  0x24   :  { %119 = vmatpush.msra.mxu0 %v99_v14  ;;  %214 = vmatpush.msra.mxu3 %v206_v39  ;;  %v193_v56 = vld [vmem:[#allocation8] sm:$0xff]  ;;  %v261_v60 = vld [vmem:[%s473_s6] ss:$0 sm:$0xff] }
  0x25   :  { %159 = vmatpush.msra.mxu1 %v139_v19  ;;  %180 = vmatpush.msra.mxu2 %v139_v19 }
  0x26   :  { %120 = vmatpush.msra.mxu0 %v98_v16  ;;  %215 = vmatpush.msra.mxu3 %v205_v40 }
  0x27   :  { %160 = vmatpush.msra.mxu1 %v138_v21  ;;  %181 = vmatpush.msra.mxu2 %v138_v21 }
  0x28   :  { %121 = vmatpush.msra.mxu0 %v97_v18  ;;  %216 = vmatpush.msra.mxu3 %v204_v41 }
  0x29   :  { %161 = vmatpush.msra.mxu1 %v137_v23  ;;  %182 = vmatpush.msra.mxu2 %v137_v23 }
  0x2a   :  { %122 = vmatpush.msra.mxu0 %v96_v20  ;;  %217 = vmatpush.msra.mxu3 %v203_v42 }
  0x2b   :  { %162 = vmatpush.msra.mxu1 %v136_v28  ;;  %183 = vmatpush.msra.mxu2 %v136_v28 }
  0x2c   :  { %123 = vmatpush.msra.mxu0 %v95_v22  ;;  %218 = vmatpush.msra.mxu3 %v202_v43 }
  0x2d   :  { %163 = vmatpush.msra.mxu1 %v135_v29  ;;  %184 = vmatpush.msra.mxu2 %v135_v29 }
  0x2e   :  { %124 = vmatpush.msra.mxu0 %v94_v24  ;;  %219 = vmatpush.msra.mxu3 %v201_v44 }
  0x2f   :  { %164 = vmatpush.msra.mxu1 %v134_v30  ;;  %185 = vmatpush.msra.mxu2 %v134_v30 }
  0x30   :  { %125 = vmatpush.msra.mxu0 %v93_v25  ;;  %220 = vmatpush.msra.mxu3 %v200_v45 }
  0x31   :  { %165 = vmatpush.msra.mxu1 %v133_v31  ;;  %186 = vmatpush.msra.mxu2 %v133_v31 }
  0x32   :  { %126 = vmatpush.msra.mxu0 %v92_v26  ;;  %221 = vmatpush.msra.mxu3 %v199_v46 }
  0x33   :  { %127 = vmatmul.f32.vlgmr.msra.gmra.mxu0 %v91_v27  ;;  %166 = vmatpush.msra.mxu1 %v132_v32 }
  0x34   :  { %187 = vmatpush.msra.mxu2 %v132_v32  ;;  %222 = vmatpush.msra.mxu3 %v198_v47 }
  0x36   :  { %223 = vmatpush.msra.mxu3 %v197_v52 }
  0x38   :  { %224 = vmatpush.msra.mxu3 %v196_v53 }
  0x3a   :  { %225 = vmatpush.msra.mxu3 %v195_v54 }
  0x3c   :  { %226 = vmatpush.msra.mxu3 %v194_v55 }
  0x3e   :  { %227 = vmatpush.msra.mxu3 %v193_v56 }
  0xb0   :  { %v128_v34 = vpop.f32.mrf.mxu0 }
  0xb1   :  { %v129_v35 = vadd.f32 %v259_v33, %v128_v34 }
  0xb3   :  { %262 = vtanh.f32 %v129_v35 }
  0xb9   :  { %v263_v36 = vpop.eup %262 }
  0xba   :  { %167 = vmatmul.f32.vlgmr.msra.gmra.mxu1 %v263_v36 }
 0x137   :  { %v168_v49 = vpop.f32.mrf.mxu1 }
 0x138   :  { %v169_v50 = vadd.f32 %v260_v48, %v168_v49 }
 0x13a   :  { %264 = vtanh.f32 %v169_v50 }
 0x140   :  { %v265_v51 = vpop.eup %264 }
 0x141   :  { %188 = vmatmul.f32.vlgmr.msra.gmra.mxu2 %v265_v51 }
 0x1c4   :  { %v189_v57 = vpop.f32.mrf.mxu2 }
 0x1c5   :  { %v190_v58 = vadd.f32 %v260_v48, %v189_v57 }
 0x1c7   :  { %266 = vtanh.f32 %v190_v58 }
 0x1cd   :  { %v267_v59 = vpop.eup %266 }
 0x1ce   :  { %228 = vmatmul.f32.vlgmr.msra.gmra.mxu3 %v267_v59 }
 0x251   :  { %v229_v61 = vpop.f32.mrf.mxu3 }
 0x252   :  { %v230_v62 = vadd.f32 %v261_v60, %v229_v61 }
 0x254   :  { %232 = vst [vmem:[#allocation10] sm:$0xff] %v230_v62 }
 0x255   :  { %243 = dma.vmem_to_hbm [thread:$0]  %s239_s24, 128, %s241_s27, [#allocation4]  }
 0x256   :  { %394 = dma.done.wait [#allocation4], 128  }
 0x257   :  { %395 = vsyncadd [#allocation4], 4294967168 }
 0x258   :  { %248 = vsyncpa [#allocation3], 1 }
 0x259   :  { %249 = vsyncpa [#allocation6], 1 }
 0x25a   :  { %250 = vsyncpa [#allocation9], 1 }
 0x25b   :  { %251 = vsyncpa [#allocation4], 1 }

</bundles_post_ra>
